<compile_context>
chip_gen: v7x
topology: tpu7x:2x2x1
jax: 0.10.0
libtpu: 0.0.40
codegen_flags: <defaults>
</compile_context>

<pallas_src>
import functools

import jax
import jax.numpy as jnp
from jax.experimental import pallas as pl
from jax.experimental.pallas import tpu as pltpu


def _round_up(x, m):
    return (x + m - 1) // m * m


def _rank_loss_kernel(pmat_mm_ref, pmat_f32_ref, out_in_ref, rt_ref, idx_ref,
                      part_ref, *, margin, resident_pmats, mm_precision):
    """One (batch_tile, permutation) grid step.

    pmat_mm_ref : (P|1, ncp, ncp) one-hot permutation (bf16 or f32, for outs/rt)
    pmat_f32_ref: (P|1, ncp, ncp) one-hot permutation (f32, for config_idxs)
    out_in_ref  : (tb, ncp) model outputs (native dtype)
    rt_ref      : (tb, ncp) config runtimes (native dtype)
    idx_ref     : (tb, ncp) int32 config indices
    part_ref    : (1, 1, ncp) f32 per-batch-tile partial sums, accumulated over
                  the permutation grid axis.
    """
    p = pl.program_id(1)

    @pl.when(p == 0)
    def _init():
        part_ref[...] = jnp.zeros(part_ref.shape, jnp.float32)

    pslot = p if resident_pmats else 0
    pmat_mm = pmat_mm_ref[pslot]          # (ncp, ncp)
    pmat_f32 = pmat_f32_ref[pslot]        # (ncp, ncp) f32

    outs = out_in_ref[...]                # (tb, ncp) native dtype
    rt = rt_ref[...]                      # (tb, ncp) native dtype
    # int32 -> f32 is exact for |idx| < 2**24.
    idx_f = idx_ref[...].astype(jnp.float32)

    # One-hot permutation on the MXU: (x @ pmat)[:, j] == x[:, perm[j]].
    # outs/rt stay in their native dtype (bf16 path when the wrapper chose a
    # bf16 pmat); idx permutation is always f32 / HIGHEST so equality below is
    # exact for large index values.
    perm_out = jnp.dot(outs, pmat_mm, preferred_element_type=jnp.float32,
                       precision=mm_precision)
    perm_rt = jnp.dot(rt, pmat_mm, preferred_element_type=jnp.float32,
                      precision=mm_precision)
    perm_idx = jnp.dot(idx_f, pmat_f32, preferred_element_type=jnp.float32,
                       precision=jax.lax.Precision.HIGHEST)

    # MarginRankingLoss with label = +1 iff rt > perm_rt else -1, written as
    # selects (no label/mask float multiplies):
    #   hinge = max(0, -label * (out - perm_out) + margin)
    # The bf16->f32 casts fuse into their consumers (no standalone copies).
    outs_f = outs.astype(jnp.float32)
    signed = jnp.where(rt.astype(jnp.float32) > perm_rt,
                       perm_out - outs_f, outs_f - perm_out)
    hinge = jnp.maximum(signed + jnp.float32(margin), 0.0)
    # config_mask = (idx != perm_idx); padded rows/columns self-mask here.
    contrib = jnp.where(idx_f != perm_idx, hinge, 0.0)

    # Sublane-only partial reduction (cheap vreg adds + one intra-vreg fold);
    # the cross-lane / cross-tile reduce is deferred to the wrapper's single
    # jnp.sum over the (nb, 1, ncp) partials.
    part_ref[0] = part_ref[0] + jnp.sum(contrib, axis=0, keepdims=True)


def _multi_perm_rank_loss_pallas(outputs, config_runtime, config_idxs, perms,
                                 margin, block_rows=None):
    bs, nc = outputs.shape
    num_perms = perms.shape[0]

    # ---- pad the config axis to a multiple of 128 (lane-dense blocks). ----
    ncp = max(128, _round_up(nc, 128))
    col_pad = ncp - nc

    # ---- batch (row) tile: big tiles amortize per-step overhead, but keep
    #      >= 2 batch tiles when the batch allows it so the "parallel" axis
    #      can shard across both TensorCores on v7x. ----
    if block_rows is not None:
        tb = _round_up(max(int(block_rows), 8), 8)
    else:
        if bs >= 16:
            tb = min(512, _round_up((bs + 1) // 2, 8))
        else:
            tb = _round_up(max(bs, 8), 8)
    # Clamp so one block's working set (double-buffered inputs + live f32
    # temporaries) stays comfortably inside scoped VMEM on all generations.
    vmem_row_budget = 12 * 1024 * 1024
    per_row_bytes = ncp * 56
    tb = max(8, min(tb, (vmem_row_budget // per_row_bytes) // 8 * 8))

    bs_pad = _round_up(bs, tb)
    row_pad = bs_pad - bs
    nb = bs_pad // tb

    if row_pad or col_pad:
        # Padded rows get constant config_idxs (0); padded columns map to
        # themselves under the extended permutation -> both self-mask, so the
        # loss numerator is unchanged.
        outputs = jnp.pad(outputs, ((0, row_pad), (0, col_pad)))
        config_runtime = jnp.pad(config_runtime, ((0, row_pad), (0, col_pad)))
        config_idxs = jnp.pad(config_idxs, ((0, row_pad), (0, col_pad)))
    config_idxs = config_idxs.astype(jnp.int32)

    # ---- precomputed one-hot permutation matrices (no per-step rebuild). ---
    perms = perms.astype(jnp.int32)
    if col_pad:
        tail = jnp.broadcast_to(jnp.arange(nc, ncp, dtype=jnp.int32),
                                (num_perms, col_pad))
        perms = jnp.concatenate([perms, tail], axis=1)   # identity on padding
    src = jnp.arange(ncp, dtype=jnp.int32)
    pmat_bool = src[None, :, None] == perms[:, None, :]  # (P, ncp, ncp)
    pmat_f32 = pmat_bool.astype(jnp.float32)

    # bf16 MXU path only when the inputs are already bf16 (one-hot selection of
    # bf16 values is exact); otherwise keep f32 at HIGHEST precision.
    if outputs.dtype == jnp.bfloat16 and config_runtime.dtype == jnp.bfloat16:
        mm_dtype = jnp.bfloat16
        pmat_mm = pmat_bool.astype(jnp.bfloat16)
        mm_precision = None
    else:
        mm_dtype = jnp.float32
        pmat_mm = pmat_f32
        mm_precision = jax.lax.Precision.HIGHEST
    mm_bytes = jnp.dtype(mm_dtype).itemsize

    # Keep all permutation matrices VMEM-resident when they fit (DMA'd once,
    # constant index_map); otherwise stream one (ncp, ncp) matrix per step.
    # TODO(synk): tile the config/column axis (3rd grid axis) for very large
    #             nc where even one pmat block stresses VMEM (v7x, 64 MiB).
    resident_bytes = 2 * num_perms * ncp * ncp * (mm_bytes + 4)  # x2 buffers
    resident_pmats = resident_bytes <= 4 * 1024 * 1024
    if resident_pmats:
        pmat_block = (num_perms, ncp, ncp)
        pmat_map = lambda b, p: (0, 0, 0)
    else:
        pmat_block = (1, ncp, ncp)
        pmat_map = lambda b, p: (p, 0, 0)

    kernel = functools.partial(_rank_loss_kernel, margin=float(margin),
                               resident_pmats=resident_pmats,
                               mm_precision=mm_precision)

    in_bytes = outputs.dtype.itemsize + config_runtime.dtype.itemsize + 4
    cost = pl.CostEstimate(
        flops=int(3 * 2 * bs_pad * ncp * ncp * num_perms),
        transcendentals=0,
        bytes_accessed=int(bs_pad * ncp * in_bytes
                           + num_perms * ncp * ncp * (mm_bytes + 4)
                           + nb * ncp * 4),
    )
    vmem_est = (2 * tb * ncp * in_bytes + 8 * tb * ncp * 4
                + (resident_bytes if resident_pmats
                   else 2 * ncp * ncp * (mm_bytes + 4)))
    vmem_limit = int(min(64 * 1024 * 1024,
                         max(32 * 1024 * 1024, 2 * vmem_est)))

    partials = pl.pallas_call(
        kernel,
        out_shape=jax.ShapeDtypeStruct((nb, 1, ncp), jnp.float32),
        grid_spec=pltpu.PrefetchScalarGridSpec(
            num_scalar_prefetch=0,
            grid=(nb, num_perms),
            in_specs=[
                pl.BlockSpec(pmat_block, pmat_map),            # one-hot (mm)
                pl.BlockSpec(pmat_block, pmat_map),            # one-hot (f32)
                pl.BlockSpec((tb, ncp), lambda b, p: (b, 0)),  # outputs
                pl.BlockSpec((tb, ncp), lambda b, p: (b, 0)),  # runtimes
                pl.BlockSpec((tb, ncp), lambda b, p: (b, 0)),  # config idxs
            ],
            out_specs=pl.BlockSpec((1, 1, ncp), lambda b, p: (b, 0, 0)),
        ),
        compiler_params=pltpu.CompilerParams(
            dimension_semantics=("parallel", "arbitrary"),
            vmem_limit_bytes=vmem_limit),
        cost_estimate=cost,
    )(pmat_mm, pmat_f32, outputs, config_runtime, config_idxs)

    # Final reduce + divide by the TRUE (unpadded) element count.
    return jnp.sum(partials) / jnp.float32(bs * nc * num_perms)


def _rank_loss_reference(outputs, config_runtime, config_idxs, perms, margin):
    """Pure-JAX reference mirroring the PyTorch module (also tiny-shape path)."""
    outputs = outputs.astype(jnp.float32)
    config_runtime = config_runtime.astype(jnp.float32)
    total = jnp.float32(0.0)
    num_perms = perms.shape[0]
    for p in range(num_perms):
        perm = perms[p]
        perm_out = outputs[:, perm]
        perm_rt = config_runtime[:, perm]
        perm_idx = config_idxs[:, perm]
        labels = jnp.where(config_runtime - perm_rt > 0, 1.0, -1.0)
        mask = jnp.where(config_idxs != perm_idx, 1.0, 0.0)
        loss = jnp.maximum(0.0, -labels * (outputs - perm_out) + margin) * mask
        total = total + jnp.mean(loss)
    return total / num_perms


def multi_element_rank_loss(outputs, config_runtime, config_idxs, *,
                            margin=0.0, number_permutations=1, key=None,
                            permutations=None, block_rows=None,
                            use_pallas=None):
    """Pallas port of MultiElementRankLoss.forward.

    `permutations` (num_permutations, nc) int32 may be supplied explicitly;
    otherwise they are drawn from `key` (torch.randperm equivalent).
    """
    bs, nc = outputs.shape
    if permutations is None:
        if key is None:
            key = jax.random.PRNGKey(0)
        permutations = jnp.stack([
            jax.random.permutation(jax.random.fold_in(key, p), nc)
            for p in range(number_permutations)])
    perms = jnp.asarray(permutations, dtype=jnp.int32)

    if use_pallas is None:
        # Below this, launch / per-step overhead dominates: let XLA fuse it.
        use_pallas = bs * nc >= 65536
    if not use_pallas:
        return _rank_loss_reference(outputs, config_runtime, config_idxs,
                                    perms, margin)
    return _multi_perm_rank_loss_pallas(outputs, config_runtime, config_idxs,
                                        perms, margin, block_rows=block_rows)


if __name__ == "__main__":
    root = jax.random.PRNGKey(0)
    k1, k2, k3, kperm, k4, k5, k6 = jax.random.split(root, 7)

    # --- Test 1: tiny shape from the module docstring, single permutation,
    #             f32 inputs (exercises the f32 MXU path + column padding). ---
    bs, nc = 2, 8
    outputs = jax.random.normal(k1, (bs, nc), dtype=jnp.float32)
    runtime = jax.random.uniform(k2, (bs, nc), dtype=jnp.float32)
    idxs = jax.random.randint(k3, (bs, nc), 0, 6, dtype=jnp.int32)
    perms = jnp.stack(
        [jax.random.permutation(jax.random.fold_in(kperm, 0), nc)])

    loss = multi_element_rank_loss(outputs, runtime, idxs, margin=0.0,
                                   permutations=perms, use_pallas=True)
    loss = jax.block_until_ready(loss)
    ref = _rank_loss_reference(outputs, runtime, idxs, perms, 0.0)
    assert jnp.allclose(loss, ref, atol=1e-6), (loss, ref)

    # --- Test 2: multiple batch tiles, fused permutations, bf16 inputs,
    #             idx values beyond bf16-exact range, nonzero margin. ---
    bs2, nc2, n_perm = 48, 256, 3
    outputs2 = jax.random.normal(k4, (bs2, nc2),
                                 dtype=jnp.float32).astype(jnp.bfloat16)
    runtime2 = jax.random.uniform(k5, (bs2, nc2),
                                  dtype=jnp.float32).astype(jnp.bfloat16)
    idxs2 = jax.random.randint(k6, (bs2, nc2), 0, 1000, dtype=jnp.int32)
    perms2 = jnp.stack([
        jax.random.permutation(jax.random.fold_in(kperm, p), nc2)
        for p in range(n_perm)])

    loss2 = multi_element_rank_loss(outputs2, runtime2, idxs2, margin=0.05,
                                    permutations=perms2, use_pallas=True)
    loss2 = jax.block_until_ready(loss2)
    ref2 = _rank_loss_reference(outputs2, runtime2, idxs2, perms2, 0.05)
    assert jnp.allclose(loss2, ref2, atol=1e-5, rtol=1e-5), (loss2, ref2)

    print("KERNEL_OK")
</pallas_src>

<mosaic_0001>
module attributes {stable_mosaic.version = 11 : i64} {
  func.func @_rank_loss_kernel(%arg0: i32, %arg1: i32, %arg2: memref<1x128x128xf32, #tpu.memory_space<vmem>>, %arg3: memref<1x128x128xf32, #tpu.memory_space<vmem>>, %arg4: memref<8x128xf32, #tpu.memory_space<vmem>>, %arg5: memref<8x128xf32, #tpu.memory_space<vmem>>, %arg6: memref<8x128xi32, #tpu.memory_space<vmem>>, %arg7: memref<1x1x128xf32, #tpu.memory_space<vmem>>) attributes {dimension_semantics = [#tpu.dimension_semantics<parallel>, #tpu.dimension_semantics<arbitrary>], iteration_bounds = array<i64: 1, 1>, scalar_prefetch = 0 : i64, scratch_operands = 0 : i64, tpu.core_type = #tpu.core_type<tc>, window_params = [{pipeline_mode = #tpu.pipeline_mode<synchronous>, transform_indices = @transform_0, window_bounds = array<i64: 1, 128, 128>}, {pipeline_mode = #tpu.pipeline_mode<synchronous>, transform_indices = @transform_1, window_bounds = array<i64: 1, 128, 128>}, {transform_indices = @transform_2, window_bounds = array<i64: 8, 128>}, {transform_indices = @transform_3, window_bounds = array<i64: 8, 128>}, {transform_indices = @transform_4, window_bounds = array<i64: 8, 128>}, {transform_indices = @transform_5, window_bounds = array<i64: 1, 1, 128>}]} {
    %c0_i32 = arith.constant 0 : i32
    %0 = arith.cmpi eq, %arg1, %c0_i32 : i32
    %1 = arith.extui %0 : i1 to i32
    %c0_i32_0 = arith.constant 0 : i32
    %2 = arith.cmpi ne, %1, %c0_i32_0 : i32
    scf.if %2 {
      %cst_22 = arith.constant 0.000000e+00 : f32
      %35 = vector.broadcast %cst_22 : f32 to vector<1x1x128xf32>
      %c0_23 = arith.constant 0 : index
      %c0_24 = arith.constant 0 : index
      %c0_25 = arith.constant 0 : index
      %36 = vector.load %arg7[%c0_23, %c0_24, %c0_25] : memref<1x1x128xf32, #tpu.memory_space<vmem>>, vector<1x1x128xf32>
      tpu.vector_store %arg7[%c0_23, %c0_24, %c0_25], %35 {strides = array<i32>} : memref<1x1x128xf32, #tpu.memory_space<vmem>>, vector<1x1x128xf32>,
    } else {
    }
    %3 = arith.index_cast %arg1 : i32 to index
    %c0 = arith.constant 0 : index
    %c0_1 = arith.constant 0 : index
    %4 = vector.load %arg2[%3, %c0, %c0_1] : memref<1x128x128xf32, #tpu.memory_space<vmem>>, vector<1x128x128xf32>
    %5 = vector.shape_cast %4 : vector<1x128x128xf32> to vector<128x128xf32>
    %6 = arith.index_cast %arg1 : i32 to index
    %c0_2 = arith.constant 0 : index
    %c0_3 = arith.constant 0 : index
    %7 = vector.load %arg3[%6, %c0_2, %c0_3] : memref<1x128x128xf32, #tpu.memory_space<vmem>>, vector<1x128x128xf32>
    %8 = vector.shape_cast %7 : vector<1x128x128xf32> to vector<128x128xf32>
    %c0_4 = arith.constant 0 : index
    %c0_5 = arith.constant 0 : index
    %9 = vector.load %arg4[%c0_4, %c0_5] : memref<8x128xf32, #tpu.memory_space<vmem>>, vector<8x128xf32>
    %c0_6 = arith.constant 0 : index
    %c0_7 = arith.constant 0 : index
    %10 = vector.load %arg5[%c0_6, %c0_7] : memref<8x128xf32, #tpu.memory_space<vmem>>, vector<8x128xf32>
    %c0_8 = arith.constant 0 : index
    %c0_9 = arith.constant 0 : index
    %11 = vector.load %arg6[%c0_8, %c0_9] : memref<8x128xi32, #tpu.memory_space<vmem>>, vector<8x128xi32>
    %12 = arith.sitofp %11 : vector<8x128xi32> to vector<8x128xf32>
    %cst = arith.constant dense<0.000000e+00> : vector<8x128xf32>
    %13 = tpu.matmul %9, %5, %cst {dimension_numbers = #tpu.dot_dimension_numbers<[1], [0], [0], [1], [0, 0, 1, 1], [], []>, precision = #tpu.contract_precision<fp32>} : vector<8x128xf32>, vector<128x128xf32>, vector<8x128xf32> -> vector<8x128xf32>
    %cst_10 = arith.constant dense<0.000000e+00> : vector<8x128xf32>
    %14 = tpu.matmul %10, %5, %cst_10 {dimension_numbers = #tpu.dot_dimension_numbers<[1], [0], [0], [1], [0, 0, 1, 1], [], []>, precision = #tpu.contract_precision<fp32>} : vector<8x128xf32>, vector<128x128xf32>, vector<8x128xf32> -> vector<8x128xf32>
    %cst_11 = arith.constant dense<0.000000e+00> : vector<8x128xf32>
    %15 = tpu.matmul %12, %8, %cst_11 {dimension_numbers = #tpu.dot_dimension_numbers<[1], [0], [0], [1], [0, 0, 1, 1], [], []>, precision = #tpu.contract_precision<fp32>} : vector<8x128xf32>, vector<128x128xf32>, vector<8x128xf32> -> vector<8x128xf32>
    %16 = arith.cmpf ogt, %10, %14 : vector<8x128xf32>
    %17 = arith.subf %13, %9 : vector<8x128xf32>
    %18 = arith.subf %9, %13 : vector<8x128xf32>
    %19 = arith.select %16, %17, %18 : vector<8x128xi1>, vector<8x128xf32>
    %cst_12 = arith.constant 0.000000e+00 : f32
    %20 = vector.broadcast %cst_12 : f32 to vector<8x128xf32>
    %21 = arith.addf %19, %20 : vector<8x128xf32>
    %cst_13 = arith.constant 0.000000e+00 : f32
    %22 = vector.broadcast %cst_13 : f32 to vector<8x128xf32>
    %23 = arith.maximumf %21, %22 : vector<8x128xf32>
    %24 = arith.cmpf one, %12, %15 : vector<8x128xf32>
    %cst_14 = arith.constant 0.000000e+00 : f32
    %25 = vector.broadcast %cst_14 : f32 to vector<8x128xf32>
    %26 = arith.select %24, %23, %25 : vector<8x128xi1>, vector<8x128xf32>
    %c0_15 = arith.constant 0 : index
    %c0_16 = arith.constant 0 : index
    %c0_17 = arith.constant 0 : index
    %27 = vector.load %arg7[%c0_15, %c0_16, %c0_17] : memref<1x1x128xf32, #tpu.memory_space<vmem>>, vector<1x1x128xf32>
    %28 = vector.shape_cast %27 : vector<1x1x128xf32> to vector<1x128xf32>
    %cst_18 = arith.constant dense<0.000000e+00> : vector<128xf32>
    %29 = vector.multi_reduction <add>, %26, %cst_18 [0] : vector<8x128xf32> to vector<128xf32>
    %30 = vector.shape_cast %29 : vector<128xf32> to vector<1x128xf32>
    %31 = arith.addf %28, %30 : vector<1x128xf32>
    %c0_19 = arith.constant 0 : index
    %c0_20 = arith.constant 0 : index
    %c0_21 = arith.constant 0 : index
    %32 = vector.load %arg7[%c0_19, %c0_20, %c0_21] : memref<1x1x128xf32, #tpu.memory_space<vmem>>, vector<1x1x128xf32>
    %33 = vector.shape_cast %32 : vector<1x1x128xf32> to vector<1x128xf32>
    %34 = vector.shape_cast %31 : vector<1x128xf32> to vector<1x1x128xf32>
    tpu.vector_store %arg7[%c0_19, %c0_20, %c0_21], %34 {strides = array<i32>} : memref<1x1x128xf32, #tpu.memory_space<vmem>>, vector<1x1x128xf32>,
    return
  }
  func.func @transform_0(%arg0: i32, %arg1: i32) -> (i32, i32, i32) {
    %c0_i32 = arith.constant 0 : i32
    %c0_i32_0 = arith.constant 0 : i32
    %c0_i32_1 = arith.constant 0 : i32
    %c0_i32_2 = arith.constant 0 : i32
    return %c0_i32, %c0_i32_0, %c0_i32_1 : i32, i32, i32
  }
  func.func @transform_1(%arg0: i32, %arg1: i32) -> (i32, i32, i32) {
    %c0_i32 = arith.constant 0 : i32
    %c0_i32_0 = arith.constant 0 : i32
    %c0_i32_1 = arith.constant 0 : i32
    %c0_i32_2 = arith.constant 0 : i32
    return %c0_i32, %c0_i32_0, %c0_i32_1 : i32, i32, i32
  }
  func.func @transform_2(%arg0: i32, %arg1: i32) -> (i32, i32) {
    %c0_i32 = arith.constant 0 : i32
    %c0_i32_0 = arith.constant 0 : i32
    return %arg0, %c0_i32 : i32, i32
  }
  func.func @transform_3(%arg0: i32, %arg1: i32) -> (i32, i32) {
    %c0_i32 = arith.constant 0 : i32
    %c0_i32_0 = arith.constant 0 : i32
    return %arg0, %c0_i32 : i32, i32
  }
  func.func @transform_4(%arg0: i32, %arg1: i32) -> (i32, i32) {
    %c0_i32 = arith.constant 0 : i32
    %c0_i32_0 = arith.constant 0 : i32
    return %arg0, %c0_i32 : i32, i32
  }
  func.func @transform_5(%arg0: i32, %arg1: i32) -> (i32, i32, i32) {
    %c0_i32 = arith.constant 0 : i32
    %c0_i32_0 = arith.constant 0 : i32
    %c0_i32_1 = arith.constant 0 : i32
    return %arg0, %c0_i32, %c0_i32_0 : i32, i32, i32
  }
}

</mosaic_0001>

<bundles_post_ra>
// kernel: tpu_custom_call.1
= control target key start
LH: loop header
LB: loop body
LE: loop exit
PB: predicated region body
PF: predicated region fallthrough
CT: control target
= control target key end

     0   :  { %10 = vsyncpa [#allocation3], 0  ;;  %s4472_s0 = inlined_call_operand.hbm [shape: f32[1,128,128], index: 0, kind: input, shape index: {}]   ;;  %s4473_s1 = inlined_call_operand.hbm [shape: f32[1,128,128], index: 1, kind: input, shape index: {}]   ;;  %s4474_s2 = inlined_call_operand.hbm [shape: f32[8,128], index: 2, kind: input, shape index: {}]   ;;  %s4475_s3 = inlined_call_operand.vmem [shape: f32[8,128], index: 3, kind: input, shape index: {}]   ;;  %s4476_s4 = inlined_call_operand.hbm [shape: s32[8,128], index: 4, kind: input, shape index: {}]   ;;  %s4477_s5 = inlined_call_operand.hbm [shape: f32[1,1,128], index: 5, kind: output, shape index: {}]  }
   0x1   :  { %11 = vsyncpa [#allocation6], 0 }
   0x2   :  { %12 = vsyncpa [#allocation9], 0 }
   0x3   :  { %13 = vsyncpa [#allocation4], 0  ;;  %s3599_s18 = smov [#allocation5]   ;;  %s3600_s20 = smov [#allocation2]  }
   0x4   :  { %s31_s19 = sshll.u32 %s3599_s18, 4  ;;  %s19_s21 = sshll.u32 %s3600_s20, 4  ;;  %s32_s19 = int_to_ptr.vmem [resolvable:$true] %s31_s19  ;;  %s3639_s21 = int_to_ptr.vmem [resolvable:$true] %s19_s21 }
   0x5   :  { %s3481_s24 = scalar_lea.hbm %s4473_s1, 2048 }
   0x6   :  { %p3482_p0 = scmp.ne.s32.totalorder %s4473_s1, %s3481_s24  ;;  %p3485_p1 = scmp.lt.u32.totalorder %s3481_s24, %s4473_s1 }
   0x8   :  { %p3487_p2 = pnand %p3485_p1, %p3482_p0 }
   0xa   :  { %3490 = shalt.err (!%p3487_p2)
}
   0xb   :  { %s3491_s29 = scalar_lea.vmem %s32_s19, 2048  ;;  %p3496_p4 = scmp.lt.s32.totalorder %s32_s19, %s32_s19 }
   0xc   :  { %p3492_p3 = scmp.ne.s32.totalorder %s32_s19, %s3491_s29  ;;  %p3497_p5 = scmp.lt.s32.totalorder %s3491_s29, %s3491_s29 }
   0xe   :  { %p3498_p6 = por %p3497_p5, %p3496_p4 }
  0x10   :  { %p3499_p7 = pnand %p3498_p6, %p3492_p3 }
  0x12   :  { %3502 = shalt.err (!%p3499_p7)
}
  0x13   :  { %s3601_s30 = smov 128   ;;  %s3602_s6 = smov 8  }
  0x14   :  { %37 = dma.hbm_to_vmem [thread:$0]  %s4473_s1, 2048, %s32_s19, [#allocation6], %s3601_s30, %s3601_s30, %s3602_s6  }
  0x15   :  { %s3503_s11 = scalar_lea.hbm %s4472_s0, 2048 }
  0x16   :  { %p3504_p8 = scmp.ne.s32.totalorder %s4472_s0, %s3503_s11  ;;  %p3507_p9 = scmp.lt.u32.totalorder %s3503_s11, %s4472_s0 }
  0x18   :  { %p3509_p10 = pnand %p3507_p9, %p3504_p8 }
  0x1a   :  { %3512 = shalt.err (!%p3509_p10)
}
  0x1b   :  { %s3513_s16 = scalar_lea.vmem %s3639_s21, 2048  ;;  %p3518_p12 = scmp.lt.s32.totalorder %s3639_s21, %s3639_s21 }
  0x1c   :  { %p3514_p11 = scmp.ne.s32.totalorder %s3639_s21, %s3513_s16  ;;  %p3519_p13 = scmp.lt.s32.totalorder %s3513_s16, %s3513_s16 }
  0x1e   :  { %p3520_p0 = por %p3519_p13, %p3518_p12 }
  0x20   :  { %p3521_p1 = pnand %p3520_p0, %p3514_p11 }
  0x22   :  { %3524 = shalt.err (!%p3521_p1)
}
  0x23   :  { %25 = dma.hbm_to_vmem [thread:$0]  %s4472_s0, 2048, %s3639_s21, [#allocation3], %s3601_s30, %s3601_s30, %s3602_s6  }
  0x24   :  { %s3603_s18 = smov [#allocation7]   ;;  %s3604_s20 = smov [#allocation8]  }
  0x25   :  { %s44_s19 = sshll.u32 %s3603_s18, 4  ;;  %s56_s22 = sshll.u32 %s3604_s20, 4  ;;  %s45_s19 = int_to_ptr.vmem [resolvable:$true] %s44_s19  ;;  %s57_s22 = int_to_ptr.vmem [resolvable:$true] %s56_s22 }
  0x26   :  { %s3525_s25 = scalar_lea.hbm %s4474_s2, 128 }
  0x27   :  { %p3526_p2 = scmp.ne.s32.totalorder %s4474_s2, %s3525_s25  ;;  %p3529_p3 = scmp.lt.u32.totalorder %s3525_s25, %s4474_s2 }
  0x29   :  { %p3531_p4 = pnand %p3529_p3, %p3526_p2 }
  0x2b   :  { %3534 = shalt.err (!%p3531_p4)
}
  0x2c   :  { %s3535_s0 = scalar_lea.vmem %s45_s19, 128  ;;  %p3540_p6 = scmp.lt.s32.totalorder %s45_s19, %s45_s19 }
  0x2d   :  { %p3536_p5 = scmp.ne.s32.totalorder %s45_s19, %s3535_s0  ;;  %p3541_p7 = scmp.lt.s32.totalorder %s3535_s0, %s3535_s0 }
  0x2f   :  { %p3542_p8 = por %p3541_p7, %p3540_p6 }
  0x31   :  { %p3543_p9 = pnand %p3542_p8, %p3536_p5 }
  0x33   :  { %3546 = shalt.err (!%p3543_p9)
}
  0x34   :  { %47 = dma.hbm_to_vmem [thread:$0]  %s4474_s2, 128, %s45_s19, [#allocation6]  }
  0x35   :  { %s3547_s8 = scalar_lea.hbm %s4476_s4, 128 }
  0x36   :  { %p3548_p10 = scmp.ne.s32.totalorder %s4476_s4, %s3547_s8  ;;  %p3551_p11 = scmp.lt.u32.totalorder %s3547_s8, %s4476_s4 }
  0x38   :  { %p3553_p12 = pnand %p3551_p11, %p3548_p10 }
  0x3a   :  { %3556 = shalt.err (!%p3553_p12)
}
  0x3b   :  { %s3557_s13 = scalar_lea.vmem %s57_s22, 128  ;;  %p3562_p0 = scmp.lt.s32.totalorder %s57_s22, %s57_s22 }
  0x3c   :  { %p3558_p13 = scmp.ne.s32.totalorder %s57_s22, %s3557_s13  ;;  %p3563_p1 = scmp.lt.s32.totalorder %s3557_s13, %s3557_s13 }
  0x3e   :  { %p3564_p2 = por %p3563_p1, %p3562_p0 }
  0x40   :  { %p3565_p3 = pnand %p3564_p2, %p3558_p13 }
  0x42   :  { %3568 = shalt.err (!%p3565_p3)
}
  0x43   :  { %59 = dma.hbm_to_vmem [thread:$0]  %s4476_s4, 128, %s57_s22, [#allocation9]  }
  0x44   :  { %3591 = dma.done.wait [#allocation3], 2048  }
  0x45   :  { %3592 = vsyncadd [#allocation3], 4294965248 }
  0x46   :  { %3593 = dma.done.wait [#allocation6], 2176  }
  0x47   :  { %3594 = vsyncadd [#allocation6], 4294965120 }
  0x48   :  { %3595 = dma.done.wait [#allocation9], 128  }
  0x49   :  { %3596 = vsyncadd [#allocation9], 4294967168  ;;  %v4486_v0 = vmov 0.0|0.0   ;;  %v4478_v1 = vmov 0.0   ;;  %vm3607_vm0 = vmmov 0   ;;  %v79_v2 = vld [vmem:[#allocation2] sm:$0xff] }
  0x4a   :  { %3009 = vmatprep.subr.bf16.mxu1 %v4486_v0  ;;  %3081 = vmatprep.subr.bf16.mxu0 %v4486_v0  ;;  %76 = vst [vmem:[#allocation10] sm:$0x1] %v4478_v1  ;;  %v80_v3 = vld [vmem:[#allocation2 + $0x8] sm:$0xff]  ;;  %v81_v4 = vld [vmem:[#allocation2 + $0x10] sm:$0xff]  ;;  %v117_v5 = vand.u32 4294901760, %v79_v2  ;;  %v82_v7 = vld [vmem:[#allocation2 + $0x18] sm:$0xff] }
  0x4b   :  { %2411 = vmatprep.mubr.msk.f32.mxu1 %vm3607_vm0, %v4478_v1  ;;  %2516 = vmatprep.mubr.msk.f32.mxu0 %vm3607_vm0, %v4478_v1  ;;  %v120_v6 = vand.u32 4294901760, %v80_v3  ;;  %v123_v8 = vand.u32 4294901760, %v81_v4  ;;  %v126_v9 = vand.u32 4294901760, %v82_v7  ;;  %v83_v10 = vld [vmem:[#allocation2 + $0x20] sm:$0xff]  ;;  %v3701_v11 = vld [vmem:[#allocation2 + $0x28] sm:$0xff]  ;;  %v3712_v16 = vld [vmem:[#allocation2 + $0x30] sm:$0xff] }
  0x4c   :  { %v129_v14 = vand.u32 4294901760, %v83_v10  ;;  %v132_v15 = vand.u32 4294901760, %v3701_v11  ;;  %v3714_v17 = vld [vmem:[#allocation2 + $0x38] sm:$0xff]  ;;  %v135_v19 = vand.u32 4294901760, %v3712_v16  ;;  %v3724_v21 = vld [vmem:[#allocation2 + $0x40] sm:$0xff]  ;;  %v3726_v22 = vld [vmem:[#allocation2 + $0x48] sm:$0xff]  ;;  %v3758_v35 = vsub.f32 %v79_v2, %v117_v5 }
  0x4d   :  { %v3703_v12 = vpack.c.bf16 %v120_v6, %v117_v5  ;;  %v3707_v13 = vpack.c.bf16 %v126_v9, %v123_v8  ;;  %v138_v20 = vand.u32 4294901760, %v3714_v17  ;;  %v112_v23 = vld [vmem:[#allocation7] sm:$0xff]  ;;  %v141_v25 = vand.u32 4294901760, %v3724_v21  ;;  %v3736_v27 = vld [vmem:[#allocation2 + $0x50] sm:$0xff]  ;;  %v3740_v28 = vld [vmem:[#allocation2 + $0x58] sm:$0xff] }
  0x4e   :  { %v3718_v18 = vpack.c.bf16 %v132_v15, %v129_v14  ;;  %v144_v26 = vand.u32 4294901760, %v3726_v22  ;;  %v3742_v29 = vand.u32 4294901760, %v112_v23  ;;  %v147_v30 = vand.u32 4294901760, %v3736_v27  ;;  %v3754_v33 = vld [vmem:[#allocation2 + $0x60] sm:$0xff]  ;;  %v3756_v34 = vld [vmem:[#allocation2 + $0x68] sm:$0xff]  ;;  %v3769_v40 = vld [vmem:[#allocation2 + $0x70] sm:$0xff] }
  0x4f   :  { %3011 = vmatpush3.bf16.msra.mxu1 %v3703_v12  ;;  %3083 = vmatpush3.bf16.msra.mxu0 %v3703_v12  ;;  %v3732_v24 = vpack.c.bf16 %v138_v20, %v135_v19  ;;  %v150_v32 = vand.u32 4294901760, %v3740_v28  ;;  %v3760_v36 = vsub.f32 %v80_v3, %v120_v6  ;;  %v153_v38 = vand.u32 4294901760, %v3754_v33  ;;  %v3783_v44 = vld [vmem:[#allocation2 + $0x78] sm:$0xff] }
  0x50   :  { %3012 = vmatprep.subr.bf16.mxu1 %v4486_v0  ;;  %3084 = vmatprep.subr.bf16.mxu0 %v4486_v0  ;;  %4524 = vst [vmem:[#allocation15_spill] sm:$0xff] %v3718_v18  ;;  %v3751_v31 = vpack.c.bf16 %v144_v26, %v141_v25  ;;  %v3765_v37 = vsub.f32 %v112_v23, %v3742_v29  ;;  %v156_v39 = vand.u32 4294901760, %v3756_v34  ;;  %v210_v45 = vand.u32 4294901760, %v3758_v35 }
  0x51   :  { %4525 = vst [vmem:[#allocation16_spill] sm:$0xff] %v3732_v24  ;;  %v3771_v41 = vsub.f32 %v81_v4, %v123_v8  ;;  %v3773_v42 = vsub.f32 %v82_v7, %v126_v9  ;;  %v3781_v43 = vpack.c.bf16 %v150_v32, %v147_v30  ;;  %v217_v46 = vand.u32 4294901760, %v3760_v36 }
  0x52   :  { %4526 = vst [vmem:[#allocation17_spill] sm:$0xff] %v3751_v31  ;;  %v159_v47 = vand.u32 4294901760, %v3769_v40  ;;  %v199_v48 = vand.u32 4294901760, %v3765_v37  ;;  %v3791_v49 = vsub.f32 %v83_v10, %v129_v14  ;;  %v3797_v50 = vpack.c.bf16 %v156_v39, %v153_v38 }
  0x53   :  { %3014 = vmatpush3.bf16.msra.mxu1 %v3707_v13  ;;  %3086 = vmatpush3.bf16.msra.mxu0 %v3707_v13  ;;  %4527 = vst [vmem:[#allocation18_spill] sm:$0xff] %v3781_v43  ;;  %v162_v51 = vand.u32 4294901760, %v3783_v44  ;;  %v224_v52 = vand.u32 4294901760, %v3771_v41  ;;  %v231_v53 = vand.u32 4294901760, %v3773_v42  ;;  %v211_v54 = vsub.f32 %v3758_v35, %v210_v45 }
  0x54   :  { %3015 = vmatprep.subr.bf16.mxu1 %v4486_v0  ;;  %3087 = vmatprep.subr.bf16.mxu0 %v4486_v0  ;;  %4528 = vst [vmem:[#allocation19_spill] sm:$0xff] %v3797_v50  ;;  %v218_v55 = vsub.f32 %v3760_v36, %v217_v46  ;;  %v3807_v56 = vsub.f32 %v3701_v11, %v132_v15  ;;  %v238_v58 = vand.u32 4294901760, %v3791_v49 }
  0x55   :  { %v200_v57 = vsub.f32 %v3765_v37, %v199_v48  ;;  %v3817_v59 = vpack.c.bf16 %v162_v51, %v159_v47  ;;  %v225_v60 = vsub.f32 %v3771_v41, %v224_v52  ;;  %v232_v61 = vsub.f32 %v3773_v42, %v231_v53 }
  0x56   :  { %v3822_v62 = vsub.f32 %v3712_v16, %v135_v19  ;;  %v212_v63 = vand.u32 4294901760, %v211_v54  ;;  %v219_v2 = vand.u32 4294901760, %v218_v55  ;;  %v245_v3 = vand.u32 4294901760, %v3807_v56 }
  0x57   :  { %3017 = vmatpush3.bf16.msra.mxu1 %v3718_v18  ;;  %3089 = vmatpush3.bf16.msra.mxu0 %v3718_v18  ;;  %v3830_v4 = vsub.f32 %v3714_v17, %v138_v20  ;;  %v201_v5 = vand.u32 4294901760, %v200_v57  ;;  %v3834_v6 = vpack.c.bf16 %v217_v46, %v210_v45  ;;  %v239_v7 = vsub.f32 %v3791_v49, %v238_v58 }
  0x58   :  { %3018 = vmatprep.subr.bf16.mxu1 %v4486_v0  ;;  %3090 = vmatprep.subr.bf16.mxu0 %v4486_v0  ;;  %v226_v8 = vand.u32 4294901760, %v225_v60  ;;  %v233_v9 = vand.u32 4294901760, %v232_v61  ;;  %v3840_v10 = vsub.f32 %v3724_v21, %v141_v25  ;;  %v3845_v11 = vsub.f32 %v3726_v22, %v144_v26 }
  0x59   :  { %4529 = vst [vmem:[#allocation20_spill] sm:$0xff] %v3834_v6  ;;  %v3849_v14 = vpack.c.bf16 %v219_v2, %v212_v63  ;;  %v246_v15 = vsub.f32 %v3807_v56, %v245_v3  ;;  %v252_v16 = vand.u32 4294901760, %v3822_v62  ;;  %v259_v17 = vand.u32 4294901760, %v3830_v4 }
  0x5a   :  { %v3856_v19 = vpack.c.bf16 %v231_v53, %v224_v52  ;;  %v240_v20 = vand.u32 4294901760, %v239_v7  ;;  %v266_v21 = vand.u32 4294901760, %v3840_v10  ;;  %v273_v22 = vand.u32 4294901760, %v3845_v11 }
  0x5b   :  { %3020 = vmatpush3.bf16.msra.mxu1 %v3732_v24  ;;  %3092 = vmatpush3.bf16.msra.mxu0 %v3732_v24  ;;  %v3863_v23 = vsub.f32 %v3736_v27, %v147_v30  ;;  %v3868_v25 = vsub.f32 %v3740_v28, %v150_v32  ;;  %v3872_v26 = vpack.c.bf16 %v233_v9, %v226_v8  ;;  %v247_v45 = vand.u32 4294901760, %v246_v15 }
  0x5c   :  { %3021 = vmatprep.subr.bf16.mxu1 %v4486_v0  ;;  %3093 = vmatprep.subr.bf16.mxu0 %v4486_v0  ;;  %4530 = vst [vmem:[#allocation21_spill] sm:$0xff] %v3856_v19  ;;  %v253_v46 = vsub.f32 %v3822_v62, %v252_v16  ;;  %v3878_v27 = vpack.c.bf16 %v245_v3, %v238_v58 }
  0x5d   :  { %v3883_v28 = vsub.f32 %v3754_v33, %v153_v38  ;;  %v267_v30 = vsub.f32 %v3840_v10, %v266_v21  ;;  %v274_v32 = vsub.f32 %v3845_v11, %v273_v22  ;;  %v280_v52 = vand.u32 4294901760, %v3863_v23 }
  0x5e   :  { %4531 = vst [vmem:[#allocation22_spill] sm:$0xff] %v3878_v27  ;;  %v287_v53 = vand.u32 4294901760, %v3868_v25  ;;  %v3895_v33 = vpack.c.bf16 %v247_v45, %v240_v20  ;;  %v254_v38 = vand.u32 4294901760, %v253_v46  ;;  %v3900_v55 = vsub.f32 %v3756_v34, %v156_v39 }
  0x5f   :  { %3023 = vmatpush3.bf16.msra.mxu1 %v3751_v31  ;;  %3095 = vmatpush3.bf16.msra.mxu0 %v3751_v31  ;;  %v3904_v57 = vpack.c.bf16 %v259_v17, %v252_v16  ;;  %v294_v58 = vand.u32 4294901760, %v3883_v28  ;;  %v268_v60 = vand.u32 4294901760, %v267_v30  ;;  %v275_v61 = vand.u32 4294901760, %v274_v32 }
  0x60   :  { %3024 = vmatprep.subr.bf16.mxu1 %v4486_v0  ;;  %3096 = vmatprep.subr.bf16.mxu0 %v4486_v0  ;;  %v281_v63 = vsub.f32 %v3863_v23, %v280_v52  ;;  %v288_v2 = vsub.f32 %v3868_v25, %v287_v53  ;;  %v301_v39 = vand.u32 4294901760, %v3900_v55  ;;  %v3917_v3 = vsub.f32 %v3769_v40, %v159_v47 }
  0x61   :  { %4532 = vst [vmem:[#allocation23_spill] sm:$0xff] %v3904_v57  ;;  %v3926_v7 = vpack.c.bf16 %v273_v22, %v266_v21  ;;  %v295_v15 = vsub.f32 %v3883_v28, %v294_v58  ;;  %v3931_v40 = vpack.c.bf16 %v275_v61, %v268_v60  ;;  %v3938_v16 = vpack.c.bf16 %v287_v53, %v280_v52 }
  0x62   :  { %v282_v8 = vand.u32 4294901760, %v281_v63  ;;  %v289_v9 = vand.u32 4294901760, %v288_v2  ;;  %v302_v47 = vsub.f32 %v3900_v55, %v301_v39  ;;  %v100_v63 = vld [vmem:[#allocation5 + $0x20] sm:$0xff]  ;;  %v101_v2 = vld [vmem:[#allocation5 + $0x28] sm:$0xff] }
  0x63   :  { %3026 = vmatpush3.bf16.msra.mxu1 %v3781_v43  ;;  %3098 = vmatpush3.bf16.msra.mxu0 %v3781_v43  ;;  %4533 = vst [vmem:[#allocation24_spill] sm:$0xff] %v3926_v7  ;;  %4534 = vst [vmem:[#allocation25_spill] sm:$0xff] %v3938_v16 }
  0x64   :  { %3027 = vmatprep.subr.bf16.mxu1 %v4486_v0  ;;  %3099 = vmatprep.subr.bf16.mxu0 %v4486_v0  ;;  %v3942_v20 = vpack.c.bf16 %v289_v9, %v282_v8  ;;  %v303_v21 = vand.u32 4294901760, %v302_v47  ;;  %v1411_v9 = vand.u32 4294901760, %v100_v63 }
  0x67   :  { %3029 = vmatpush3.bf16.msra.mxu1 %v3797_v50  ;;  %3101 = vmatpush3.bf16.msra.mxu0 %v3797_v50 }
  0x68   :  { %3030 = vmatprep.subr.bf16.mxu1 %v4486_v0  ;;  %3102 = vmatprep.subr.bf16.mxu0 %v4486_v0 }
  0x6b   :  { %3032 = vmatpush3.bf16.msra.mxu1 %v3817_v59  ;;  %3104 = vmatpush3.bf16.msra.mxu0 %v3817_v59 }
  0x6c   :  { %3033 = vmatprep.subr.bf16.mxu1 %v4486_v0  ;;  %3105 = vmatprep.subr.bf16.mxu0 %v4486_v0 }
  0x6e   :  { %2412 = vmatmul.mubr.f32.vlgmr.msra.gmra.mrb[0].mxu1 %v201_v5  ;;  %2517 = vmatmul.mubr.f32.vlgmr.msra.gmra.mrb[0].mxu0 %v199_v48  ;;  %v260_v48 = vsub.f32 %v3830_v4, %v259_v17  ;;  %v3922_v5 = vsub.f32 %v3783_v44, %v162_v51  ;;  %v308_v44 = vand.u32 4294901760, %v3917_v3  ;;  %v296_v17 = vand.u32 4294901760, %v295_v15 }
  0x6f   :  { %3035 = vmatpush3.bf16.msra.mxu1 %v3849_v14  ;;  %3107 = vmatpush3.bf16.msra.mxu0 %v3834_v6  ;;  %v1414_v15 = vand.u32 4294901760, %v101_v2 }
  0x70   :  { %3036 = vmatprep.subr.bf16.mxu1 %v4486_v0  ;;  %3108 = vmatprep.subr.bf16.mxu0 %v4486_v0  ;;  %v261_v54 = vand.u32 4294901760, %v260_v48  ;;  %v315_v51 = vand.u32 4294901760, %v3922_v5  ;;  %v309_v22 = vsub.f32 %v3917_v3, %v308_v44  ;;  %v3950_v46 = vpack.c.bf16 %v303_v21, %v296_v17  ;;  %v103_v17 = vld [vmem:[#allocation5 + $0x38] sm:$0xff] }
  0x71   :  { %2446 = vmatprep.mubr.msk.f32.mxu1 %vm3607_vm0, %v4478_v1  ;;  %2551 = vmatprep.mubr.msk.f32.mxu0 %vm3607_vm0, %v4478_v1  ;;  %v3952_v48 = vpack.c.bf16 %v301_v39, %v294_v58  ;;  %v4062_v21 = vsub.f32 %v100_v63, %v1411_v9 }
  0x72   :  { %v3911_v34 = vpack.c.bf16 %v261_v54, %v254_v38  ;;  %v316_v45 = vsub.f32 %v3922_v5, %v315_v51  ;;  %v310_v30 = vand.u32 4294901760, %v309_v22  ;;  %v3960_v53 = vpack.c.bf16 %v315_v51, %v308_v44  ;;  %v102_v51 = vld [vmem:[#allocation5 + $0x30] sm:$0xff] }
  0x73   :  { %3038 = vmatpush3.bf16.msra.mxu1 %v3872_v26  ;;  %3110 = vmatpush3.bf16.msra.mxu0 %v3856_v19  ;;  %4535 = vst [vmem:[#allocation26_spill] sm:$0xff] %v3952_v48  ;;  %v3968_v38 = vpack.c.bf16 %v3760_v36, %v3758_v35  ;;  %v3978_v54 = vpack.c.bf16 %v3773_v42, %v3771_v41 }
  0x74   :  { %3039 = vmatprep.subr.bf16.mxu1 %v4486_v0  ;;  %3111 = vmatprep.subr.bf16.mxu0 %v4486_v0  ;;  %v317_v32 = vand.u32 4294901760, %v316_v45  ;;  %4536 = vst [vmem:[#allocation27_spill] sm:$0xff] %v3960_v53  ;;  %v3990_v35 = vpack.c.bf16 %v3807_v56, %v3791_v49  ;;  %v3998_v36 = vpack.c.bf16 %v3830_v4, %v3822_v62  ;;  %v96_v49 = vld [vmem:[#allocation5] sm:$0xff]  ;;  %v97_v56 = vld [vmem:[#allocation5 + $0x8] sm:$0xff] }
  0x75   :  { %v4006_v41 = vpack.c.bf16 %v3845_v11, %v3840_v10  ;;  %v4014_v42 = vpack.c.bf16 %v3868_v25, %v3863_v23  ;;  %v4022_v62 = vpack.c.bf16 %v3900_v55, %v3883_v28  ;;  %v1399_v4 = vand.u32 4294901760, %v96_v49  ;;  %v98_v11 = vld [vmem:[#allocation5 + $0x10] sm:$0xff]  ;;  %v99_v23 = vld [vmem:[#allocation5 + $0x18] sm:$0xff] }
  0x76   :  { %v3958_v52 = vpack.c.bf16 %v317_v32, %v310_v30  ;;  %v1402_v10 = vand.u32 4294901760, %v97_v56  ;;  %v4030_v25 = vpack.c.bf16 %v3922_v5, %v3917_v3  ;;  %v1405_v55 = vand.u32 4294901760, %v98_v11 }
  0x77   :  { %3041 = vmatpush3.bf16.msra.mxu1 %v3895_v33  ;;  %3113 = vmatpush3.bf16.msra.mxu0 %v3878_v27  ;;  %v4032_v58 = vsub.f32 %v96_v49, %v1399_v4  ;;  %v1408_v60 = vand.u32 4294901760, %v99_v23  ;;  %v4064_v22 = vsub.f32 %v101_v2, %v1414_v15  ;;  %v4080_v49 = vpack.c.bf16 %v1414_v15, %v1411_v9 }
  0x78   :  { %3042 = vmatprep.subr.bf16.mxu1 %v4486_v0  ;;  %3114 = vmatprep.subr.bf16.mxu0 %v4486_v0  ;;  %v4034_v28 = vsub.f32 %v97_v56, %v1402_v10  ;;  %v4038_v61 = vpack.c.bf16 %v1402_v10, %v1399_v4  ;;  %v4042_v39 = vsub.f32 %v98_v11, %v1405_v55  ;;  %v104_v56 = vld [vmem:[#allocation5 + $0x40] sm:$0xff]  ;;  %v105_v4 = vld [vmem:[#allocation5 + $0x48] sm:$0xff] }
  0x79   :  { %v4044_v3 = vsub.f32 %v99_v23, %v1408_v60  ;;  %v4485_v5 = vand.u32 4294901760, %v4032_v58  ;;  %v4058_v44 = vpack.c.bf16 %v1408_v60, %v1405_v55  ;;  %4539 = vst [vmem:[#allocation30_spill] sm:$0xff] %v4080_v49  ;;  %v114_v23 = vld [vmem:[#allocation8] sm:$0xff]  ;;  %v4483_v55 = vand.u32 4294901760, %v4062_v21 }
  0x7a   :  { %v4484_v8 = vand.u32 4294901760, %v4034_v28  ;;  %v4481_v45 = vand.u32 4294901760, %v4042_v39  ;;  %v4482_v60 = vand.u32 4294901760, %v4064_v22  ;;  %v1423_v63 = vand.u32 4294901760, %v104_v56 }
  0x7b   :  { %3044 = vmatpush3.bf16.msra.mxu1 %v3911_v34  ;;  %3116 = vmatpush3.bf16.msra.mxu0 %v3904_v57  ;;  %v4480_v30 = vand.u32 4294901760, %v4044_v3  ;;  %v1426_v2 = vand.u32 4294901760, %v105_v4 }
  0x7c   :  { %3045 = vmatprep.subr.bf16.mxu1 %v4486_v0  ;;  %3117 = vmatprep.subr.bf16.mxu0 %v4486_v0  ;;  %v4054_v47 = vpack.c.bf16 %v4484_v8, %v4485_v5  ;;  %v4096_v9 = vpack.c.bf16 %v4482_v60, %v4483_v55 }
  0x7d   :  { %v4078_v32 = vpack.c.bf16 %v4480_v30, %v4481_v45  ;;  %v4108_v30 = vld [vmem:[#allocation5 + $0x50] sm:$0xff]  ;;  %v4113_v45 = vld [vmem:[%s4475_s3] sm:$0xff]  ;;  %v4134_v8 = vpack.c.bf16 %v1426_v2, %v1423_v63  ;;  %s3608_s3 = smov [#allocation10]  }
  0x7e   :  { %4537 = vst [vmem:[#allocation28_spill] sm:$0xff] %v4054_v47  ;;  %4540 = vst [vmem:[#allocation31_spill] sm:$0xff] %v4096_v9  ;;  %v4127_v60 = vand.u32 4294901760, %v4113_v45  ;;  %v4158_v9 = vld [vmem:[#allocation5 + $0x70] sm:$0xff]  ;;  %v4551_v47 = vand.u32 4294901760, %v4034_v28  ;;  %s2062_s16 = sshll.u32 %s3608_s3, 4  ;;  %s2063_s16 = int_to_ptr.vmem [resolvable:$true] %s2062_s16 }
  0x7f   :  { %3047 = vmatpush3.bf16.msra.mxu1 %v3931_v40  ;;  %3119 = vmatpush3.bf16.msra.mxu0 %v3926_v7  ;;  %4538 = vst [vmem:[#allocation29_spill] sm:$0xff] %v4078_v32  ;;  %4543 = vst [vmem:[#allocation34_spill] sm:$0xff] %v4113_v45  ;;  %v4550_v32 = vand.u32 4294901760, %v4032_v58  ;;  %s3569_s1 = scalar_lea.vmem %s2063_s16, 16  ;;  %s3573_s17 = scalar_lea.vmem %s2063_s16, 32 }
  0x80   :  { %3048 = vmatprep.subr.bf16.mxu1 %v4486_v0  ;;  %3120 = vmatprep.subr.bf16.mxu0 %v4486_v0  ;;  %4545 = vst [vmem:[#allocation36_spill] sm:$0xff] %v4134_v8  ;;  %v1500_v6 = vsub.f32 %v4034_v28, %v4551_v47  ;;  %p3570_p4 = scmp.ne.s32.totalorder %s2063_s16, %s3569_s1  ;;  %p3574_p5 = scmp.lt.s32.totalorder %s2063_s16, %s2063_s16 }
  0x81   :  { %v1493_v19 = vsub.f32 %v4032_v58, %v4550_v32  ;;  %p3575_p6 = scmp.lt.s32.totalorder %s3573_s17, %s3569_s1 }
  0x82   :  { %v1501_v47 = vand.u32 4294901760, %v1500_v6  ;;  %v4558_v6 = vand.u32 4294901760, %v4064_v22 }
  0x83   :  { %3050 = vmatpush3.bf16.msra.mxu1 %v3942_v20  ;;  %3122 = vmatpush3.bf16.msra.mxu0 %v3938_v16  ;;  %v1494_v32 = vand.u32 4294901760, %v1493_v19  ;;  %p3576_p7 = por %p3575_p6, %p3574_p5 }
  0x84   :  { %3051 = vmatprep.subr.bf16.mxu1 %v4486_v0  ;;  %3123 = vmatprep.subr.bf16.mxu0 %v4486_v0  ;;  %v1528_v19 = vsub.f32 %v4064_v22, %v4558_v6 }
  0x85   :  { %p3577_p8 = pnand %p3576_p7, %p3570_p4 }
  0x86   :  { %v1529_v6 = vand.u32 4294901760, %v1528_v19 }
  0x87   :  { %3053 = vmatpush3.bf16.msra.mxu1 %v3950_v46  ;;  %3125 = vmatpush3.bf16.msra.mxu0 %v3952_v48  ;;  %v109_v48 = vld [vmem:[#allocation5 + $0x68] sm:$0xff] }
  0x88   :  { %3054 = vmatprep.subr.bf16.mxu1 %v4486_v0  ;;  %3126 = vmatprep.subr.bf16.mxu0 %v4486_v0  ;;  %v1438_v57 = vand.u32 4294901760, %v109_v48 }
  0x8b   :  { %3056 = vmatpush3.bf16.msra.mxu1 %v3958_v52  ;;  %3128 = vmatpush3.bf16.msra.mxu0 %v3960_v53  ;;  %v108_v53 = vld [vmem:[#allocation5 + $0x60] sm:$0xff] }
  0x8c   :  { %3057 = vmatprep.subr.bf16.mxu1 %v4486_v0  ;;  %3129 = vmatprep.subr.bf16.mxu0 %v4486_v0 }
  0x8e   :  { %2447 = vmatmul.mubr.f32.vlgmr.msra.gmra.mrb[0].mxu1 %v3742_v29  ;;  %2552 = vmatmul.mubr.f32.vlgmr.msra.gmra.mrb[0].mxu0 %v3742_v29 }
  0x8f   :  { %3059 = vmatpush3.bf16.msra.mxu1 %v3968_v38  ;;  %3131 = vmatpush3.bf16.msra.mxu0 %v3703_v12 }
  0x90   :  { %3060 = vmatprep.subr.bf16.mxu1 %v4486_v0  ;;  %3132 = vmatprep.subr.bf16.mxu0 %v4486_v0 }
  0x91   :  { %2481 = vmatprep.mubr.msk.f32.mxu1 %vm3607_vm0, %v4478_v1  ;;  %2586 = vmatprep.mubr.msk.f32.mxu0 %vm3607_vm0, %v4478_v1 }
  0x93   :  { %3062 = vmatpush3.bf16.msra.mxu1 %v3978_v54  ;;  %3134 = vmatpush3.bf16.msra.mxu0 %v3707_v13 }
  0x94   :  { %3063 = vmatprep.subr.bf16.mxu1 %v4486_v0  ;;  %3135 = vmatprep.subr.bf16.mxu0 %v4486_v0 }
  0x97   :  { %3065 = vmatpush3.bf16.msra.mxu1 %v3990_v35  ;;  %3137 = vmatpush3.bf16.msra.mxu0 %v3718_v18 }
  0x98   :  { %3066 = vmatprep.subr.bf16.mxu1 %v4486_v0  ;;  %3138 = vmatprep.subr.bf16.mxu0 %v4486_v0 }
  0x9b   :  { %3068 = vmatpush3.bf16.msra.mxu1 %v3998_v36  ;;  %3140 = vmatpush3.bf16.msra.mxu0 %v3732_v24 }
  0x9c   :  { %3069 = vmatprep.subr.bf16.mxu1 %v4486_v0  ;;  %3141 = vmatprep.subr.bf16.mxu0 %v4486_v0 }
  0x9f   :  { %3071 = vmatpush3.bf16.msra.mxu1 %v4006_v41  ;;  %3143 = vmatpush3.bf16.msra.mxu0 %v3751_v31 }
  0xa0   :  { %3072 = vmatprep.subr.bf16.mxu1 %v4486_v0  ;;  %3144 = vmatprep.subr.bf16.mxu0 %v4486_v0 }
  0xa3   :  { %3074 = vmatpush3.bf16.msra.mxu1 %v4014_v42  ;;  %3146 = vmatpush3.bf16.msra.mxu0 %v3781_v43 }
  0xa4   :  { %3075 = vmatprep.subr.bf16.mxu1 %v4486_v0  ;;  %3147 = vmatprep.subr.bf16.mxu0 %v4486_v0 }
  0xa7   :  { %3077 = vmatpush3.bf16.msra.mxu1 %v4022_v62  ;;  %3149 = vmatpush3.bf16.msra.mxu0 %v3797_v50 }
  0xa8   :  { %3078 = vmatprep.subr.bf16.mxu1 %v4486_v0  ;;  %3150 = vmatprep.subr.bf16.mxu0 %v4486_v0 }
  0xab   :  { %3080 = vmatpush3.bf16.msra.mxu1 %v4030_v25  ;;  %3152 = vmatpush3.bf16.msra.mxu0 %v3817_v59 }
  0xac   :  { %3153 = vmatprep.subr.bf16.mxu1 %v4486_v0  ;;  %3297 = vmatprep.subr.bf16.mxu0 %v4486_v0 }
  0xae   :  { %2482 = vmatmul.mubr.f32.vlgmr.msra.gmra.mrb[0].mxu1 %v3765_v37  ;;  %2587 = vmatmul.mubr.f32.vlgmr.msra.gmra.mrb[0].mxu0 %v3742_v29  ;;  %v1417_v29 = vand.u32 4294901760, %v102_v51  ;;  %v1420_v37 = vand.u32 4294901760, %v103_v17 }
  0xaf   :  { %3155 = vmatpush3.bf16.msra.mxu1 %v3703_v12  ;;  %3299 = vmatpush3.bf16.msra.mxu0 %v4038_v61 }
  0xb0   :  { %3156 = vmatprep.subr.bf16.mxu1 %v4486_v0  ;;  %3300 = vmatprep.subr.bf16.mxu0 %v4486_v0  ;;  %v4084_v10 = vsub.f32 %v102_v51, %v1417_v29  ;;  %v4086_v11 = vsub.f32 %v103_v17, %v1420_v37  ;;  %v4098_v15 = vpack.c.bf16 %v1420_v37, %v1417_v29  ;;  %v4100_v51 = vcvt.s32.f32 %v114_v23  ;;  %v107_v23 = vld [vmem:[#allocation5 + $0x58] sm:$0xff] }
  0xb1   :  { %2621 = vmatprep.mubr.msk.f32.mxu1 %vm3607_vm0, %v4478_v1  ;;  %2831 = vmatprep.mubr.msk.f32.mxu0 %vm3607_vm0, %v4478_v1  ;;  %v4104_v17 = vsub.f32 %v104_v56, %v1423_v63  ;;  %v4106_v1 = vsub.f32 %v105_v4, %v1426_v2  ;;  %v1429_v4 = vand.u32 4294901760, %v4108_v30  ;;  %v1432_v5 = vand.u32 4294901760, %v107_v23 }
  0xb2   :  { %4541 = vst [vmem:[#allocation32_spill] sm:$0xff] %v4098_v15  ;;  %4542 = vst [vmem:[#allocation33_spill] sm:$0xff] %v4100_v51  ;;  %v4489_v29 = vand.u32 4294901760, %v4084_v10  ;;  %v4488_v37 = vand.u32 4294901760, %v4086_v11  ;;  %v4130_v55 = vand.u32 4294901760, %v4100_v51  ;;  %v4148_v63 = vsub.f32 %v4113_v45, %v4127_v60 }
  0xb3   :  { %3158 = vmatpush3.bf16.msra.mxu1 %v3707_v13  ;;  %3302 = vmatpush3.bf16.msra.mxu0 %v4058_v44  ;;  %v4156_v7 = vpack.c.bf16 %v1432_v5, %v1429_v4 }
  0xb4   :  { %3159 = vmatprep.subr.bf16.mxu1 %v4486_v0  ;;  %3303 = vmatprep.subr.bf16.mxu0 %v4486_v0  ;;  %v4123_v56 = vpack.c.bf16 %v4488_v37, %v4489_v29  ;;  %v4495_v37 = vand.u32 4294901760, %v4106_v1  ;;  %v4546_v29 = vmov 0.0|0.0   ;;  %v4152_v2 = vsub.f32 %v4100_v51, %v4130_v55 }
  0xb5   :  { %4548 = vst [vmem:[#allocation38_spill] sm:$0xff] %v4156_v7 }
  0xb6   :  { %4544 = vst [vmem:[#allocation35_spill] sm:$0xff] %v4123_v56  ;;  %v1435_v56 = vand.u32 4294901760, %v108_v53 }
  0xb7   :  { %3161 = vmatpush3.bf16.msra.mxu1 %v3718_v18  ;;  %3305 = vmatpush3.bf16.msra.mxu0 %v4080_v49 }
  0xb8   :  { %3162 = vmatprep.subr.bf16.mxu1 %v4486_v0  ;;  %3306 = vmatprep.subr.bf16.mxu0 %v4486_v0  ;;  %v4496_v0 = vand.u32 4294901760, %v4104_v17  ;;  %v4170_v27 = vpack.c.bf16 %v1438_v57, %v1435_v56 }
  0xba   :  { %v4144_v16 = vpack.c.bf16 %v4495_v37, %v4496_v0  ;;  %v4160_v37 = vld [vmem:[#allocation5 + $0x78] sm:$0xff]  ;;  %v1441_v0 = vand.u32 4294901760, %v4158_v9  ;;  %4549 = vst [vmem:[#allocation39_spill] sm:$0xff] %v4170_v27 }
  0xbb   :  { %3164 = vmatpush3.bf16.msra.mxu1 %v3732_v24  ;;  %3308 = vmatpush3.bf16.msra.mxu0 %v4098_v15  ;;  %v1444_v51 = vand.u32 4294901760, %v4160_v37  ;;  %v4556_v24 = vand.u32 4294901760, %v4044_v3 }
  0xbc   :  { %3165 = vmatprep.subr.bf16.mxu1 %v4546_v29  ;;  %3309 = vmatprep.subr.bf16.mxu0 %v4546_v29  ;;  %4547 = vst [vmem:[#allocation37_spill] sm:$0xff] %v4144_v16  ;;  %v4553_v16 = vand.u32 4294901760, %v4148_v63 }
  0xbd   :  { %v4180_v45 = vpack.c.bf16 %v1444_v51, %v1441_v0  ;;  %v1514_v49 = vsub.f32 %v4044_v3, %v4556_v24 }
  0xbf   :  { %3167 = vmatpush3.bf16.msra.mxu1 %v3751_v31  ;;  %3311 = vmatpush3.bf16.msra.mxu0 %v4134_v8  ;;  %4552 = vst [vmem:[#allocation40_spill] sm:$0xff] %v4180_v45  ;;  %v4555_v31 = vand.u32 4294901760, %v4042_v39  ;;  %v1515_v18 = vand.u32 4294901760, %v1514_v49 }
  0xc0   :  { %3168 = vmatprep.subr.bf16.mxu1 %v4546_v29  ;;  %3312 = vmatprep.subr.bf16.mxu0 %v4546_v29 }
  0xc1   :  { %v1507_v15 = vsub.f32 %v4042_v39, %v4555_v31  ;;  %v3322_v31 = vpack.c.bf16 %v1501_v47, %v1494_v32  ;;  %v4560_v32 = vand.u32 4294901760, %v4086_v11 }
  0xc3   :  { %3170 = vmatpush3.bf16.msra.mxu1 %v3781_v43  ;;  %3314 = vmatpush3.bf16.msra.mxu0 %v4156_v7  ;;  %v841_v7 = vsub.f32 %v4148_v63, %v4553_v16  ;;  %v4554_v43 = vand.u32 4294901760, %v4152_v2  ;;  %v1508_v24 = vand.u32 4294901760, %v1507_v15  ;;  %v4559_v15 = vand.u32 4294901760, %v4084_v10 }
  0xc4   :  { %3171 = vmatprep.subr.bf16.mxu1 %v4546_v29  ;;  %3315 = vmatprep.subr.bf16.mxu0 %v4546_v29  ;;  %v1542_v47 = vsub.f32 %v4086_v11, %v4560_v32 }
  0xc5   :  { %v1482_v8 = vsub.f32 %v4152_v2, %v4554_v43  ;;  %v842_v16 = vand.u32 4294901760, %v841_v7  ;;  %v4209_v7 = vsub.f32 %v4108_v30, %v1429_v4  ;;  %v1535_v49 = vsub.f32 %v4084_v10, %v4559_v15 }
  0xc7   :  { %3173 = vmatpush3.bf16.msra.mxu1 %v3797_v50  ;;  %3317 = vmatpush3.bf16.msra.mxu0 %v4170_v27  ;;  %v1483_v43 = vand.u32 4294901760, %v1482_v8  ;;  %v4557_v50 = vand.u32 4294901760, %v4062_v21  ;;  %v4211_v8 = vsub.f32 %v107_v23, %v1432_v5  ;;  %v4222_v5 = vsub.f32 %v108_v53, %v1435_v56 }
  0xc8   :  { %3174 = vmatprep.subr.bf16.mxu1 %v4546_v29  ;;  %3318 = vmatprep.subr.bf16.mxu0 %v4546_v29  ;;  %v1562_v30 = vand.u32 4294901760, %v4209_v7  ;;  %v1536_v4 = vand.u32 4294901760, %v1535_v49  ;;  %v4562_v53 = vand.u32 4294901760, %v4104_v17 }
  0xc9   :  { %v1521_v27 = vsub.f32 %v4062_v21, %v4557_v50  ;;  %v1569_v23 = vand.u32 4294901760, %v4211_v8 }
  0xca   :  { %v1549_v56 = vsub.f32 %v4104_v17, %v4562_v53 }
  0xcb   :  { %3176 = vmatpush3.bf16.msra.mxu1 %v3817_v59  ;;  %3320 = vmatpush3.bf16.msra.mxu0 %v4180_v45  ;;  %v1522_v50 = vand.u32 4294901760, %v1521_v27  ;;  %v3325_v45 = vpack.c.bf16 %v1515_v18, %v1508_v24  ;;  %v4561_v27 = vmov 0.0   ;;  %v4228_v18 = vsub.f32 %v109_v48, %v1438_v57 }
  0xcc   :  { %3177 = vmatprep.subr.bf16.mxu1 %v4546_v29  ;;  %3321 = vmatprep.subr.bf16.mxu0 %v4546_v29  ;;  %v4242_v57 = vsub.f32 %v4158_v9, %v1441_v0  ;;  %v1563_v48 = vsub.f32 %v4209_v7, %v1562_v30 }
  0xcd   :  { %v1583_v9 = vand.u32 4294901760, %v4228_v18 }
  0xce   :  { %2622 = vmatmul.mubr.f32.vlgmr.msra.gmra.mrb[2].mxu1 %v842_v16  ;;  %2832 = vmatmul.mubr.f32.vlgmr.msra.gmra.mrb[2].mxu0 %v1483_v43  ;;  %v1543_v16 = vand.u32 4294901760, %v1542_v47  ;;  %v4563_v43 = vand.u32 4294901760, %v4106_v1 }
  0xcf   :  { %3179 = vmatpush3.bf16.msra.mxu1 %v3849_v14  ;;  %3323 = vmatpush3.bf16.msra.mxu0 %v3322_v31  ;;  %v3328_v14 = vpack.c.bf16 %v1529_v6, %v1522_v50  ;;  %v1576_v31 = vand.u32 4294901760, %v4222_v5  ;;  %v1550_v50 = vand.u32 4294901760, %v1549_v56  ;;  %v1590_v6 = vand.u32 4294901760, %v4242_v57 }
  0xd0   :  { %3180 = vmatprep.subr.bf16.mxu1 %v4546_v29  ;;  %3324 = vmatprep.subr.bf16.mxu0 %v4546_v29  ;;  %v1556_v19 = vsub.f32 %v4106_v1, %v4563_v43  ;;  %v3331_v24 = vpack.c.bf16 %v1543_v16, %v1536_v4  ;;  %v1584_v49 = vsub.f32 %v4228_v18, %v1583_v9 }
  0xd1   :  { %2656 = vmatprep.mubr.msk.f32.mxu1 %vm3607_vm0, %v4561_v27  ;;  %2866 = vmatprep.mubr.msk.f32.mxu0 %vm3607_vm0, %v4561_v27  ;;  %v1591_v47 = vsub.f32 %v4242_v57, %v1590_v6 }
  0xd2   :  { %v1557_v0 = vand.u32 4294901760, %v1556_v19  ;;  %v1585_v4 = vand.u32 4294901760, %v1584_v49  ;;  %v4577_v19 = vld [vmem:[#allocation20_spill] sm:$0xff]  ;;  %v3412_v49 = vpack.c.bf16 %v1583_v9, %v1576_v31 }
  0xd3   :  { %3182 = vmatpush3.bf16.msra.mxu1 %v3872_v26  ;;  %3326 = vmatpush3.bf16.msra.mxu0 %v3325_v45  ;;  %v4245_v26 = vsub.f32 %v4160_v37, %v1444_v51  ;;  %v1570_v45 = vsub.f32 %v4211_v8, %v1569_v23  ;;  %v1564_v51 = vand.u32 4294901760, %v1563_v48  ;;  %v1577_v37 = vsub.f32 %v4222_v5, %v1576_v31  ;;  %v4578_v48 = vld [vmem:[#allocation28_spill] sm:$0xff]  ;;  %v4590_v31 = vld [vmem:[#allocation34_spill] sm:$0xff] }
  0xd4   :  { %3183 = vmatprep.subr.bf16.mxu1 %v4546_v29  ;;  %3327 = vmatprep.subr.bf16.mxu0 %v4546_v29  ;;  %v1592_v56 = vand.u32 4294901760, %v1591_v47 }
  0xd5   :  { %v1571_v15 = vand.u32 4294901760, %v1570_v45  ;;  %v1597_v32 = vand.u32 4294901760, %v4245_v26  ;;  %v4579_v45 = vld [vmem:[#allocation21_spill] sm:$0xff] }
  0xd7   :  { %3185 = vmatpush3.bf16.msra.mxu1 %v3895_v33  ;;  %3329 = vmatpush3.bf16.msra.mxu0 %v3328_v14  ;;  %v3334_v33 = vpack.c.bf16 %v1557_v0, %v1550_v50  ;;  %v1578_v14 = vand.u32 4294901760, %v1577_v37  ;;  %v1598_v16 = vsub.f32 %v4245_v26, %v1597_v32  ;;  %v4583_v50 = vld [vmem:[#allocation23_spill] sm:$0xff]  ;;  %v4586_v37 = vld [vmem:[#allocation37_spill] sm:$0xff] }
  0xd8   :  { %3186 = vmatprep.subr.bf16.mxu1 %v4546_v29  ;;  %3330 = vmatprep.subr.bf16.mxu0 %v4546_v29  ;;  %v4584_v0 = vld [vmem:[#allocation35_spill] sm:$0xff] }
  0xd9   :  { %v3340_v53 = vpack.c.bf16 %v1585_v4, %v1578_v14  ;;  %v1599_v43 = vand.u32 4294901760, %v1598_v16  ;;  %v2047_v16 = vld [vmem:[#allocation10] sm:$0x1] }
  0xdb   :  { %3188 = vmatpush3.bf16.msra.mxu1 %v3911_v34  ;;  %3332 = vmatpush3.bf16.msra.mxu0 %v3331_v24  ;;  %v3337_v34 = vpack.c.bf16 %v1571_v15, %v1564_v51  ;;  %v4582_v24 = vld [vmem:[#allocation31_spill] sm:$0xff]  ;;  %v4585_v51 = vld [vmem:[#allocation24_spill] sm:$0xff]  ;;  %v4587_v15 = vld [vmem:[#allocation25_spill] sm:$0xff] }
  0xdc   :  { %3189 = vmatprep.subr.bf16.mxu1 %v4546_v29  ;;  %3333 = vmatprep.subr.bf16.mxu0 %v4546_v29 }
  0xdf   :  { %3191 = vmatpush3.bf16.msra.mxu1 %v3931_v40  ;;  %3335 = vmatpush3.bf16.msra.mxu0 %v3334_v33  ;;  %v3343_v40 = vpack.c.bf16 %v1599_v43, %v1592_v56  ;;  %v3409_v33 = vpack.c.bf16 %v1569_v23, %v1562_v30 }
  0xe0   :  { %3192 = vmatprep.subr.bf16.mxu1 %v4546_v29  ;;  %3336 = vmatprep.subr.bf16.mxu0 %v4546_v29 }
  0xe3   :  { %3194 = vmatpush3.bf16.msra.mxu1 %v3942_v20  ;;  %3338 = vmatpush3.bf16.msra.mxu0 %v3337_v34  ;;  %v3346_v20 = vpack.c.bf16 %v4034_v28, %v4032_v58  ;;  %v4568_v58 = vld [vmem:[#allocation17_spill] sm:$0xff]  ;;  %v4569_v28 = vld [vmem:[#allocation36_spill] sm:$0xff] }
  0xe4   :  { %3195 = vmatprep.subr.bf16.mxu1 %v4546_v29  ;;  %3339 = vmatprep.subr.bf16.mxu0 %v4546_v29 }
  0xe7   :  { %3197 = vmatpush3.bf16.msra.mxu1 %v3950_v46  ;;  %3341 = vmatpush3.bf16.msra.mxu0 %v3340_v53  ;;  %v3349_v46 = vpack.c.bf16 %v4044_v3, %v4042_v39  ;;  %v4570_v39 = vld [vmem:[#allocation18_spill] sm:$0xff] }
  0xe8   :  { %3198 = vmatprep.subr.bf16.mxu1 %v4546_v29  ;;  %3342 = vmatprep.subr.bf16.mxu0 %v4546_v29  ;;  %v4571_v3 = vld [vmem:[#allocation38_spill] sm:$0xff] }
  0xeb   :  { %3200 = vmatpush3.bf16.msra.mxu1 %v3958_v52  ;;  %3344 = vmatpush3.bf16.msra.mxu0 %v3343_v40  ;;  %v3352_v52 = vpack.c.bf16 %v4064_v22, %v4062_v21  ;;  %v4572_v21 = vld [vmem:[#allocation19_spill] sm:$0xff] }
  0xec   :  { %3201 = vmatprep.subr.bf16.mxu1 %v4546_v29  ;;  %3345 = vmatprep.subr.bf16.mxu0 %v4546_v29  ;;  %v4573_v22 = vld [vmem:[#allocation39_spill] sm:$0xff] }
  0xee   :  { %2657 = vmatmul.mubr.f32.vlgmr.msra.gmra.mrb[2].mxu1 %v4127_v60  ;;  %2867 = vmatmul.mubr.f32.vlgmr.msra.gmra.mrb[2].mxu0 %v4130_v55 }
  0xef   :  { %3203 = vmatpush3.bf16.msra.mxu1 %v3968_v38  ;;  %3347 = vmatpush3.bf16.msra.mxu0 %v3346_v20  ;;  %v3355_v38 = vpack.c.bf16 %v4086_v11, %v4084_v10  ;;  %v4574_v10 = vld [vmem:[#allocation40_spill] sm:$0xff]  ;;  %v4575_v11 = vand.u32 4294901760, %v4148_v63 }
  0xf0   :  { %3204 = vmatprep.subr.bf16.mxu1 %v4546_v29  ;;  %3348 = vmatprep.subr.bf16.mxu0 %v4546_v29 }
  0xf1   :  { %2691 = vmatprep.mubr.msk.f32.mxu1 %vm3607_vm0, %v4561_v27  ;;  %2901 = vmatprep.mubr.msk.f32.mxu0 %vm3607_vm0, %v4561_v27 }
  0xf3   :  { %3206 = vmatpush3.bf16.msra.mxu1 %v3978_v54  ;;  %3350 = vmatpush3.bf16.msra.mxu0 %v3349_v46  ;;  %v3358_v54 = vpack.c.bf16 %v4106_v1, %v4104_v17  ;;  %v3364_v1 = vpack.c.bf16 %v4228_v18, %v4222_v5  ;;  %v4576_v17 = vand.u32 4294901760, %v4152_v2  ;;  %v4589_v5 = vld [vmem:[#allocation27_spill] sm:$0xff]  ;;  %v3480_v18 = vld [vmem:[#allocation7] sm:$0xff] }
  0xf4   :  { %3207 = vmatprep.subr.bf16.mxu1 %v4546_v29  ;;  %3351 = vmatprep.subr.bf16.mxu0 %v4546_v29 }
  0xf7   :  { %3209 = vmatpush3.bf16.msra.mxu1 %v3990_v35  ;;  %3353 = vmatpush3.bf16.msra.mxu0 %v3352_v52  ;;  %v3361_v35 = vpack.c.bf16 %v4211_v8, %v4209_v7  ;;  %v4588_v7 = vld [vmem:[#allocation26_spill] sm:$0xff]  ;;  %v3415_v8 = vpack.c.bf16 %v1597_v32, %v1590_v6  ;;  %v4591_v32 = vld [vmem:[#allocation33_spill] sm:$0xff] }
  0xf8   :  { %3210 = vmatprep.subr.bf16.mxu1 %v4546_v29  ;;  %3354 = vmatprep.subr.bf16.mxu0 %v4546_v29 }
  0xfb   :  { %3212 = vmatpush3.bf16.msra.mxu1 %v3998_v36  ;;  %3356 = vmatpush3.bf16.msra.mxu0 %v3355_v38  ;;  %v3367_v36 = vpack.c.bf16 %v4245_v26, %v4242_v57 }
  0xfc   :  { %3213 = vmatprep.subr.bf16.mxu1 %v4546_v29  ;;  %3357 = vmatprep.subr.bf16.mxu0 %v4546_v29 }
  0xff   :  { %3215 = vmatpush3.bf16.msra.mxu1 %v4006_v41  ;;  %3359 = vmatpush3.bf16.msra.mxu0 %v3358_v54  ;;  %v4564_v41 = vld [vmem:[#allocation15_spill] sm:$0xff] }
 0x100   :  { %3216 = vmatprep.subr.bf16.mxu1 %v4546_v29  ;;  %3360 = vmatprep.subr.bf16.mxu0 %v4546_v29 }
 0x103   :  { %3218 = vmatpush3.bf16.msra.mxu1 %v4014_v42  ;;  %3362 = vmatpush3.bf16.msra.mxu0 %v3361_v35  ;;  %v4565_v42 = vld [vmem:[#allocation30_spill] sm:$0xff] }
 0x104   :  { %3219 = vmatprep.subr.bf16.mxu1 %v4546_v29  ;;  %3363 = vmatprep.subr.bf16.mxu0 %v4546_v29 }
 0x107   :  { %3221 = vmatpush3.bf16.msra.mxu1 %v4022_v62  ;;  %3365 = vmatpush3.bf16.msra.mxu0 %v3364_v1  ;;  %v4566_v62 = vld [vmem:[#allocation16_spill] sm:$0xff] }
 0x108   :  { %3222 = vmatprep.subr.bf16.mxu1 %v4546_v29  ;;  %3366 = vmatprep.subr.bf16.mxu0 %v4546_v29 }
 0x10b   :  { %3224 = vmatpush3.bf16.msra.mxu1 %v4030_v25  ;;  %3368 = vmatpush3.bf16.msra.mxu0 %v3367_v36  ;;  %v4567_v25 = vld [vmem:[#allocation32_spill] sm:$0xff] }
 0x10c   :  { %3225 = vmatprep.subr.bf16.mxu1 %v4546_v29  ;;  %3369 = vmatprep.subr.bf16.mxu0 %v4546_v29 }
 0x10e   :  { %2692 = vmatmul.mubr.f32.vlgmr.msra.gmra.mrb[2].mxu1 %v4148_v63  ;;  %2902 = vmatmul.mubr.f32.vlgmr.msra.gmra.mrb[2].mxu0 %v4152_v2  ;;  %v4580_v63 = vld [vmem:[#allocation29_spill] sm:$0xff]  ;;  %v4581_v2 = vld [vmem:[#allocation22_spill] sm:$0xff] }
 0x10f   :  { %3227 = vmatpush3.bf16.msra.mxu1 %v3703_v12  ;;  %3371 = vmatpush3.bf16.msra.mxu0 %v4038_v61 }
 0x110   :  { %3228 = vmatprep.subr.bf16.mxu1 %v4546_v29  ;;  %3372 = vmatprep.subr.bf16.mxu0 %v4546_v29 }
 0x111   :  { %2726 = vmatprep.mubr.msk.f32.mxu1 %vm3607_vm0, %v4561_v27  ;;  %2936 = vmatprep.mubr.msk.f32.mxu0 %vm3607_vm0, %v4561_v27 }
 0x113   :  { %3230 = vmatpush3.bf16.msra.mxu1 %v3707_v13  ;;  %3374 = vmatpush3.bf16.msra.mxu0 %v4058_v44 }
 0x114   :  { %3231 = vmatprep.subr.bf16.mxu1 %v4546_v29  ;;  %3375 = vmatprep.subr.bf16.mxu0 %v4546_v29 }
 0x117   :  { %3233 = vmatpush3.bf16.msra.mxu1 %v4564_v41  ;;  %3377 = vmatpush3.bf16.msra.mxu0 %v4565_v42 }
 0x118   :  { %3234 = vmatprep.subr.bf16.mxu1 %v4546_v29  ;;  %3378 = vmatprep.subr.bf16.mxu0 %v4546_v29 }
 0x11b   :  { %3236 = vmatpush3.bf16.msra.mxu1 %v4566_v62  ;;  %3380 = vmatpush3.bf16.msra.mxu0 %v4567_v25 }
 0x11c   :  { %3237 = vmatprep.subr.bf16.mxu1 %v4546_v29  ;;  %3381 = vmatprep.subr.bf16.mxu0 %v4546_v29 }
 0x11f   :  { %3239 = vmatpush3.bf16.msra.mxu1 %v4568_v58  ;;  %3383 = vmatpush3.bf16.msra.mxu0 %v4569_v28 }
 0x120   :  { %3240 = vmatprep.subr.bf16.mxu1 %v4546_v29  ;;  %3384 = vmatprep.subr.bf16.mxu0 %v4546_v29 }
 0x123   :  { %3242 = vmatpush3.bf16.msra.mxu1 %v4570_v39  ;;  %3386 = vmatpush3.bf16.msra.mxu0 %v4571_v3 }
 0x124   :  { %3243 = vmatprep.subr.bf16.mxu1 %v4546_v29  ;;  %3387 = vmatprep.subr.bf16.mxu0 %v4546_v29 }
 0x127   :  { %3245 = vmatpush3.bf16.msra.mxu1 %v4572_v21  ;;  %3389 = vmatpush3.bf16.msra.mxu0 %v4573_v22 }
 0x128   :  { %3246 = vmatprep.subr.bf16.mxu1 %v4546_v29  ;;  %3390 = vmatprep.subr.bf16.mxu0 %v4546_v29 }
 0x12b   :  { %3248 = vmatpush3.bf16.msra.mxu1 %v3817_v59  ;;  %3392 = vmatpush3.bf16.msra.mxu0 %v4574_v10 }
 0x12c   :  { %3249 = vmatprep.subr.bf16.mxu1 %v4546_v29  ;;  %3393 = vmatprep.subr.bf16.mxu0 %v4546_v29 }
 0x12e   :  { %2727 = vmatmul.mubr.f32.vlgmr.msra.gmra.mrb[2].mxu1 %v4575_v11  ;;  %2937 = vmatmul.mubr.f32.vlgmr.msra.gmra.mrb[2].mxu0 %v4576_v17 }
 0x12f   :  { %3251 = vmatpush3.bf16.msra.mxu1 %v4577_v19  ;;  %3395 = vmatpush3.bf16.msra.mxu0 %v4578_v48 }
 0x130   :  { %3252 = vmatprep.subr.bf16.mxu1 %v4546_v29  ;;  %3396 = vmatprep.subr.bf16.mxu0 %v4546_v29 }
 0x131   :  { %2761 = vmatprep.mubr.msk.f32.mxu1 %vm3607_vm0, %v4561_v27  ;;  %2971 = vmatprep.mubr.msk.f32.mxu0 %vm3607_vm0, %v4561_v27 }
 0x133   :  { %3254 = vmatpush3.bf16.msra.mxu1 %v4579_v45  ;;  %3398 = vmatpush3.bf16.msra.mxu0 %v4580_v63 }
 0x134   :  { %3255 = vmatprep.subr.bf16.mxu1 %v4546_v29  ;;  %3399 = vmatprep.subr.bf16.mxu0 %v4546_v29 }
 0x137   :  { %3257 = vmatpush3.bf16.msra.mxu1 %v4581_v2  ;;  %3401 = vmatpush3.bf16.msra.mxu0 %v4582_v24 }
 0x138   :  { %3258 = vmatprep.subr.bf16.mxu1 %v4546_v29  ;;  %3402 = vmatprep.subr.bf16.mxu0 %v4546_v29 }
 0x13b   :  { %3260 = vmatpush3.bf16.msra.mxu1 %v4583_v50  ;;  %3404 = vmatpush3.bf16.msra.mxu0 %v4584_v0 }
 0x13c   :  { %3261 = vmatprep.subr.bf16.mxu1 %v4546_v29  ;;  %3405 = vmatprep.subr.bf16.mxu0 %v4546_v29 }
 0x13f   :  { %3263 = vmatpush3.bf16.msra.mxu1 %v4585_v51  ;;  %3407 = vmatpush3.bf16.msra.mxu0 %v4586_v37 }
 0x140   :  { %3264 = vmatprep.subr.bf16.mxu1 %v4546_v29  ;;  %3408 = vmatprep.subr.bf16.mxu0 %v4546_v29 }
 0x143   :  { %3266 = vmatpush3.bf16.msra.mxu1 %v4587_v15  ;;  %3410 = vmatpush3.bf16.msra.mxu0 %v3409_v33 }
 0x144   :  { %3267 = vmatprep.subr.bf16.mxu1 %v4546_v29  ;;  %3411 = vmatprep.subr.bf16.mxu0 %v4546_v29 }
 0x147   :  { %3269 = vmatpush3.bf16.msra.mxu1 %v4588_v7  ;;  %3413 = vmatpush3.bf16.msra.mxu0 %v3412_v49 }
 0x148   :  { %3270 = vmatprep.subr.bf16.mxu1 %v4546_v29  ;;  %3414 = vmatprep.subr.bf16.mxu0 %v4546_v29 }
 0x14b   :  { %3272 = vmatpush3.bf16.msra.mxu1 %v4589_v5  ;;  %3416 = vmatpush3.bf16.msra.mxu0 %v3415_v8 }
 0x14c   :  { %3273 = vmatprep.subr.bf16.mxu1 %v4546_v29  ;;  %3417 = vmatprep.subr.bf16.mxu0 %v4546_v29 }
 0x14e   :  { %2762 = vmatmul.mubr.f32.vlgmr.msra.gmra.mrb[2].mxu1 %v4127_v60  ;;  %2972 = vmatmul.mubr.f32.vlgmr.msra.gmra.mrb[2].mxu0 %v4130_v55 }
 0x14f   :  { %3275 = vmatpush3.bf16.msra.mxu1 %v3703_v12  ;;  %3419 = vmatpush3.bf16.msra.mxu0 %v4038_v61 }
 0x150   :  { %3276 = vmatprep.subr.bf16.mxu1 %v4546_v29  ;;  %3420 = vmatprep.subr.bf16.mxu0 %v4546_v29 }
 0x151   :  { %2796 = vmatprep.mubr.msk.f32.mxu1 %vm3607_vm0, %v4561_v27  ;;  %3006 = vmatprep.mubr.msk.f32.mxu0 %vm3607_vm0, %v4561_v27 }
 0x153   :  { %3278 = vmatpush3.bf16.msra.mxu1 %v3707_v13  ;;  %3422 = vmatpush3.bf16.msra.mxu0 %v4058_v44 }
 0x154   :  { %3279 = vmatprep.subr.bf16.mxu1 %v4546_v29  ;;  %3423 = vmatprep.subr.bf16.mxu0 %v4546_v29 }
 0x157   :  { %3281 = vmatpush3.bf16.msra.mxu1 %v4564_v41  ;;  %3425 = vmatpush3.bf16.msra.mxu0 %v4565_v42 }
 0x158   :  { %3282 = vmatprep.subr.bf16.mxu1 %v4546_v29  ;;  %3426 = vmatprep.subr.bf16.mxu0 %v4546_v29 }
 0x15b   :  { %3284 = vmatpush3.bf16.msra.mxu1 %v4566_v62  ;;  %3428 = vmatpush3.bf16.msra.mxu0 %v4567_v25 }
 0x15c   :  { %3285 = vmatprep.subr.bf16.mxu1 %v4546_v29  ;;  %3429 = vmatprep.subr.bf16.mxu0 %v4546_v29 }
 0x15f   :  { %3287 = vmatpush3.bf16.msra.mxu1 %v4568_v58  ;;  %3431 = vmatpush3.bf16.msra.mxu0 %v4569_v28 }
 0x160   :  { %3288 = vmatprep.subr.bf16.mxu1 %v4546_v29  ;;  %3432 = vmatprep.subr.bf16.mxu0 %v4546_v29 }
 0x163   :  { %3290 = vmatpush3.bf16.msra.mxu1 %v4570_v39  ;;  %3434 = vmatpush3.bf16.msra.mxu0 %v4571_v3 }
 0x164   :  { %3291 = vmatprep.subr.bf16.mxu1 %v4546_v29  ;;  %3435 = vmatprep.subr.bf16.mxu0 %v4546_v29 }
 0x167   :  { %3293 = vmatpush3.bf16.msra.mxu1 %v4572_v21  ;;  %3437 = vmatpush3.bf16.msra.mxu0 %v4573_v22 }
 0x168   :  { %3294 = vmatprep.subr.bf16.mxu1 %v4546_v29  ;;  %3438 = vmatprep.subr.bf16.mxu0 %v4546_v29 }
 0x16b   :  { %3296 = vmatpush3.bf16.msra.mxu1 %v3817_v59  ;;  %3440 = vmatpush3.bf16.msra.mxu0 %v4574_v10 }
 0x16e   :  { %2797 = vmatmul.mubr.f32.vlgmr.msra.gmra.mrb[2].mxu1 %v4127_v60  ;;  %3007 = vmatmul.mubr.f32.vlgmr.msra.gmra.mrb[2].mxu0 %v4130_v55 }
 0x181   :  { %v458_v12 = vpop.f32.mrb[0].mxu1  ;;  %v753_v13 = vpop.f32.mrb[0].mxu0 }
 0x182   :  { %v3441_v61 = vadd.f32 %v753_v13, %v458_v12  ;;  %v2483_v44 = vpop.f32.mrb[1].mxu1  ;;  %v2588_v27 = vpop.f32.mrb[1].mxu0 }
 0x184   :  { %v2040_v30 = vsub.f32 %v3441_v61, %v3480_v18  ;;  %v2041_v23 = vsub.f32 %v3480_v18, %v3441_v61 }
 0x241   :  { %v1394_v57 = vpop.f32.mrb[2].mxu1  ;;  %v2035_v26 = vpop.f32.mrb[2].mxu0 }
 0x242   :  { %vm2039_vm1 = vcmp.gt.f32.partialorder %v4590_v31, %v1394_v57  ;;  %v2798_v29 = vpop.f32.mrb[3].mxu1  ;;  %v3008_v59 = vpop.f32.mrb[3].mxu0  ;;  %vm2045_vm2 = vcmp.ne.f32.partialorder %v4591_v32, %v2035_v26 }
 0x243   :  { %v2042_v9 = vsel %vm2039_vm1, %v2040_v30, %v2041_v23 }
 0x244   :  { %v2044_v6 = vmax.f32 %v2042_v9, 0.0 }
 0x246   :  { %v2046_v60 = vsel %vm2045_vm2, %v2044_v6, 0.0 }
 0x247   :  { %v2048_v55 = vrot.slane %v2046_v60, 4 }
 0x249   :  { %v2049_v47 = vadd.f32 %v2048_v55, %v2046_v60 }
 0x24b   :  { %v2050_v34 = vrot.slane %v2049_v47, 2 }
 0x24d   :  { %v2051_v14 = vadd.f32 %v2050_v34, %v2049_v47 }
 0x24f   :  { %v2052_v4 = vrot.slane %v2051_v14, 1 }
 0x251   :  { %v2053_v53 = vadd.f32 %v2052_v4, %v2051_v14 }
 0x253   :  { %v2054_v56 = vadd.f32 %v2053_v53, %v2047_v16 }
 0x255   :  { %2055 = vst [vmem:[#allocation10] sm:$0x1] %v2054_v56 }
 0x256   :  { %3580 = shalt.err (!%p3577_p8)
}
 0x257   :  { %s3581_s20 = scalar_lea.hbm %s4477_s5, 16 }
 0x258   :  { %p3582_p9 = scmp.ne.s32.totalorder %s4477_s5, %s3581_s20  ;;  %p3585_p10 = scmp.lt.u32.totalorder %s3581_s20, %s4477_s5 }
 0x25a   :  { %p3587_p11 = pnand %p3585_p10, %p3582_p9 }
 0x25c   :  { %3590 = shalt.err (!%p3587_p11)
}
 0x25d   :  { %2065 = dma.vmem_to_hbm [thread:$0]  %s2063_s16, 16, %s4477_s5, [#allocation4]  }
 0x25e   :  { %3597 = dma.done.wait [#allocation4], 16  }
 0x25f   :  { %3598 = vsyncadd [#allocation4], 4294967280 }
 0x260   :  { %2069 = vsyncpa [#allocation3], 1 }
 0x261   :  { %2070 = vsyncpa [#allocation6], 1 }
 0x262   :  { %2071 = vsyncpa [#allocation9], 1 }
 0x263   :  { %2072 = vsyncpa [#allocation4], 1 }

</bundles_post_ra>
